<compile_context>
chip_gen: v6e
topology: v6e:2x2x1
jax: 0.10.0
libtpu: 0.0.40
codegen_flags: <defaults>
</compile_context>

<pallas_src>
from functools import partial

import numpy as np
import jax
import jax.numpy as jnp
from jax.experimental import pallas as pl
from jax.experimental.pallas import tpu as pltpu

_MAX_BT = 32  # caps the static per-image unroll inside the kernel


# --------------------------------------------------------------------------- #
# Kernels
# --------------------------------------------------------------------------- #
def _gibbs_kernel_packed(x_ref, mask2_ref, fwa_ref, fwc_ref, fhr_ref, fhi_ref,
                         o_ref):
    """Lane-packed path: spectra kept as [re | im] along lanes (W % 128 == 0)."""
    bt, h, w = x_ref.shape
    cd = fwa_ref.dtype                       # MXU operand dtype (bf16 or f32)

    fwa = fwa_ref[...]                       # (W, 2W)  [Fw_re | Fw_im]
    fwc = fwc_ref[...]                       # (2W, W)  [Fw_re ; Fw_im]
    fhr = fhr_ref[...]                       # (H, H)   C = cos(-2*pi*h*h'/H)
    fhi = fhi_ref[...]                       # (H, H)   D = sin(-2*pi*h*h'/H)
    mask2 = mask2_ref[...]                   # (H, 2W)  f32, 1/(H*W) folded in

    def swap_neg(z):                         # [P | Q] -> [Q | -P]  (lane halves)
        return jnp.concatenate([z[:, w:], -z[:, :w]], axis=-1)

    # Stage A: forward W-DFT, merged over the batch tile, re|im packed along N.
    xw = x_ref[...].reshape(bt * h, w).astype(cd)          # leading-dim reshape: free
    ap = jnp.dot(xw, fwa, preferred_element_type=jnp.float32)   # (Bt*H, 2W) = [P|Q]

    for b in range(bt):                      # static unroll; no (Bt,H,H) broadcasts
        z = ap[b * h:(b + 1) * h, :]                        # (H, 2W), row-aligned slice
        zs = swap_neg(z)
        # Forward H-DFT: [K_re|K_im] = C @ Z - D @ S(Z)
        k = (jnp.dot(fhr, z.astype(cd), preferred_element_type=jnp.float32)
             - jnp.dot(fhi, zs.astype(cd), preferred_element_type=jnp.float32))
        km = k * mask2                                      # low-pass + IDFT scale
        kms = swap_neg(km)
        # Inverse H-DFT (conj): [B_re|B_im] = C @ KM + D @ S(KM)
        bm = (jnp.dot(fhr, km.astype(cd), preferred_element_type=jnp.float32)
              + jnp.dot(fhi, kms.astype(cd), preferred_element_type=jnp.float32))
        # Inverse W-DFT, real part only: single K-packed matmul (no VPU add).
        ob = jnp.dot(bm.astype(cd), fwc, preferred_element_type=jnp.float32)
        o_ref[b] = ob.astype(o_ref.dtype)


def _gibbs_kernel_split(x_ref, mask_ref, fwr_ref, fwi_ref, fhr_ref, fhi_ref,
                        fhs_ref, o_ref):
    """Split re/im path with 3-matmul Karatsuba complex products (any W)."""
    bt, h, w = x_ref.shape
    cd = fwr_ref.dtype

    fwr = fwr_ref[...]                       # (W, W) cos
    fwi = fwi_ref[...]                       # (W, W) sin
    fhr = fhr_ref[...]                       # (H, H) C
    fhi = fhi_ref[...]                       # (H, H) D
    fhs = fhs_ref[...]                       # (H, H) C + D   (Karatsuba)
    mask = mask_ref[...]                     # (H, W) f32, 1/(H*W) folded in

    # Stage A: forward W-DFT, merged over the batch tile.
    xw = x_ref[...].reshape(bt * h, w).astype(cd)
    a_re = jnp.dot(xw, fwr, preferred_element_type=jnp.float32)   # (Bt*H, W)
    a_im = jnp.dot(xw, fwi, preferred_element_type=jnp.float32)

    for b in range(bt):                      # static unroll; un-broadcast (H,H) mats
        p = a_re[b * h:(b + 1) * h, :]
        q = a_im[b * h:(b + 1) * h, :]
        # Forward H-DFT: (C + iD)(P + iQ), Karatsuba.
        t1 = jnp.dot(fhr, p.astype(cd), preferred_element_type=jnp.float32)
        t2 = jnp.dot(fhi, q.astype(cd), preferred_element_type=jnp.float32)
        t3 = jnp.dot(fhs, (p + q).astype(cd), preferred_element_type=jnp.float32)
        k_re = t1 - t2
        k_im = t3 - t1 - t2
        km_re = k_re * mask
        km_im = k_im * mask
        # Inverse H-DFT: (C - iD)(P' + iQ'), Karatsuba.
        u1 = jnp.dot(fhr, km_re.astype(cd), preferred_element_type=jnp.float32)
        u2 = jnp.dot(fhi, km_im.astype(cd), preferred_element_type=jnp.float32)
        u3 = jnp.dot(fhs, (km_im - km_re).astype(cd),
                     preferred_element_type=jnp.float32)
        b_re = u1 + u2
        b_im = u3 + u1 - u2
        # Inverse W-DFT, real part only.
        ob = (jnp.dot(b_re.astype(cd), fwr, preferred_element_type=jnp.float32)
              + jnp.dot(b_im.astype(cd), fwi, preferred_element_type=jnp.float32))
        o_ref[b] = ob.astype(o_ref.dtype)


# --------------------------------------------------------------------------- #
# Host-side constants / helpers
# --------------------------------------------------------------------------- #
def _dft_mats_np(n):
    i = np.arange(n, dtype=np.float64)
    ang = -2.0 * np.pi * np.outer(i, i) / n
    return np.cos(ang), np.sin(ang)


def _unshifted_dist2(h, w):
    """Squared distance-from-center grid, already ifftshifted (numpy constants)."""
    ch, cw = (h - 1) / 2.0, (w - 1) / 2.0
    ih = np.arange(h, dtype=np.float64)[:, None]
    iw = np.arange(w, dtype=np.float64)[None, :]
    dist2 = (ih - ch) ** 2 + (iw - cw) ** 2
    return np.fft.ifftshift(dist2), float(ch * ch + cw * cw)


def _chip_info():
    """Per-generation VMEM / MXU-width / TensorCore-count heuristics."""
    kind = ""
    try:
        kind = jax.devices()[0].device_kind.lower()
    except Exception:
        pass
    if "v7" in kind or "tpu7" in kind or "7x" in kind:
        info = {"vmem": 64 << 20, "mxu": 256, "cores": 2}      # v7x: 64 MiB / TC
    elif "v6" in kind:
        info = {"vmem": 128 << 20, "mxu": 256, "cores": 1}
    elif "v5 lite" in kind or "v5e" in kind or "v5lite" in kind:
        info = {"vmem": 128 << 20, "mxu": 128, "cores": 1}
    else:  # unknown / older parts: conservative VMEM, narrow MXU, assume 2 cores
        info = {"vmem": 64 << 20, "mxu": 128, "cores": 2}
    try:
        info["vmem"] = int(pltpu.get_tpu_info().vmem_capacity_bytes)
    except Exception:
        pass
    return info


def _pick_batch_tile(b, h, w, info, batch_tile=None):
    if batch_tile is not None:
        return max(1, min(int(batch_tile), max(b, 1), _MAX_BT))
    budget = max(info["vmem"] - (12 << 20), 16 << 20)
    # ~4 MiB blocks on 128 MiB parts (v5e/v6e), ~2 MiB on 64 MiB-per-TC parts (v7x).
    blk_cap = (4 << 20) if info["vmem"] >= (96 << 20) else (2 << 20)
    blk_cap = min(blk_cap, budget // 20)
    per_img = h * w * 4
    bt = max(1, min(_MAX_BT, blk_cap // per_img, b))
    if info["cores"] >= 2 and b >= 2:
        bt = min(bt, max(1, b // 2))     # keep grid >= 2 so both TensorCores work
    return int(bt)


def _const_spec(shape):
    n = len(shape)
    return pl.BlockSpec(shape, lambda i, n=n: (0,) * n)


# --------------------------------------------------------------------------- #
# pallas_call wrapper
# --------------------------------------------------------------------------- #
@partial(jax.jit, static_argnames=("compute_dtype", "packed", "bt"))
def _gibbs_impl(img, alpha, *, compute_dtype, packed, bt):
    b, h, w = img.shape
    cd = compute_dtype

    fwr_np, fwi_np = _dft_mats_np(w)
    fhr_np, fhi_np = _dft_mats_np(h)

    # Binary low-pass mask in *unshifted* frequency order (no in-kernel shifts),
    # squared-distance compare (no sqrt), 1/(H*W) IDFT normalisation folded in.
    # alpha == 0 -> all-zero mask (the torch reference divides by zero there).
    dist2_np, maxd2 = _unshifted_dist2(h, w)
    alpha = alpha.astype(jnp.float32)
    keep = jnp.asarray(dist2_np, jnp.float32) <= (alpha * alpha) * jnp.float32(maxd2)
    mask = jnp.where(keep, jnp.float32(1.0 / (h * w)), jnp.float32(0.0))

    if packed:
        consts = (jnp.concatenate([mask, mask], axis=1),                    # (H, 2W)
                  jnp.asarray(np.concatenate([fwr_np, fwi_np], axis=1), cd),  # (W, 2W)
                  jnp.asarray(np.concatenate([fwr_np, fwi_np], axis=0), cd),  # (2W, W)
                  jnp.asarray(fhr_np, cd),
                  jnp.asarray(fhi_np, cd))
        kernel = _gibbs_kernel_packed
    else:
        consts = (mask,                                                     # (H, W)
                  jnp.asarray(fwr_np, cd), jnp.asarray(fwi_np, cd),
                  jnp.asarray(fhr_np, cd), jnp.asarray(fhi_np, cd),
                  jnp.asarray(fhr_np + fhi_np, cd))
        kernel = _gibbs_kernel_split

    # Pad B up to a multiple of the tile so awkward batch sizes keep the big tile.
    n_blk = -(-b // bt)
    b_pad = n_blk * bt
    if b_pad != b:
        img = jnp.concatenate(
            [img, jnp.zeros((b_pad - b, h, w), img.dtype)], axis=0)

    # Generation-aware VMEM budget from the actual footprint.
    info = _chip_info()
    budget = max(info["vmem"] - (12 << 20), 16 << 20)
    cds = np.dtype(cd).itemsize
    blk = bt * h * w * 4
    const_bytes = 2 * sum(int(np.prod(c.shape)) * c.dtype.itemsize for c in consts)
    io_bytes = 4 * blk                                   # double-buffered in + out
    work_bytes = 3 * blk + 24 * h * (2 * w) * 4 + 4 * h * w * cds
    vmem_limit = int(min(budget,
                         max(24 << 20,
                             const_bytes + io_bytes + work_bytes + (8 << 20))))

    out = pl.pallas_call(
        kernel,
        out_shape=jax.ShapeDtypeStruct((b_pad, h, w), jnp.float32),
        grid_spec=pltpu.PrefetchScalarGridSpec(
            num_scalar_prefetch=0,
            grid=(n_blk,),
            in_specs=[pl.BlockSpec((bt, h, w), lambda i: (i, 0, 0))]
                     + [_const_spec(tuple(c.shape)) for c in consts],
            out_specs=pl.BlockSpec((bt, h, w), lambda i: (i, 0, 0)),
        ),
        compiler_params=pltpu.CompilerParams(
            dimension_semantics=("parallel",),
            vmem_limit_bytes=vmem_limit),
    )(img, *consts)
    return out[:b]


def gibbs_noise_layer(img, alpha, compute_dtype=jnp.bfloat16, *,
                      pack_kspace=None, batch_tile=None):
    """Gibbs / truncation-artifact low-pass filter on a batch of 2-D images.

    img:   (B, H, W) float array.
    alpha: scalar in [0, 1]; 1.0 ~ identity.  (The torch module samples
           torch.rand(1) when alpha is None; pass an explicit value here.)
    compute_dtype: MXU operand dtype.  bfloat16 (default) = fast MXU path with
           f32 accumulation; pass jnp.float32 for full precision.
    pack_kspace: None = auto (lane-pack re|im when W % 128 == 0 and 2*W fits the
           MXU width); True/False to force (packing still requires W % 128 == 0).
    batch_tile: override the images-per-grid-step tile (mostly for tests).
    """
    img = jnp.asarray(img, jnp.float32)
    if img.ndim != 3:
        # TODO(synk): volumetric (B, H, W, D) inputs need a third DFT stage.
        raise NotImplementedError("only (B, H, W) images are supported")
    alpha = jnp.asarray(alpha, jnp.float32)
    b, h, w = img.shape

    info = _chip_info()
    if pack_kspace is None:
        packed = (w % 128 == 0) and (2 * w <= info["mxu"])
    else:
        packed = bool(pack_kspace) and (w % 128 == 0)
    bt = _pick_batch_tile(b, h, w, info, batch_tile)
    return _gibbs_impl(img, alpha, compute_dtype=np.dtype(compute_dtype),
                       packed=packed, bt=bt)


# --------------------------------------------------------------------------- #
# Pure-JAX reference (replica of the PyTorch forward) and self-test
# --------------------------------------------------------------------------- #
def gibbs_reference(img, alpha):
    n_dims = img.ndim - 1
    axes = tuple(range(-n_dims, 0))
    k = jnp.fft.fftshift(jnp.fft.fftn(img, axes=axes), axes=axes)
    shape = img.shape[1:]
    center = (jnp.array(shape, dtype=jnp.float32) - 1.0) / 2.0
    coords = jnp.meshgrid(*[jnp.arange(s, dtype=jnp.float32) for s in shape],
                          indexing="ij")
    dist = jnp.sqrt(sum((c - cc) ** 2 for c, cc in zip(coords, center)))
    alpha_norm = alpha * dist.max()
    norm_dist = dist / alpha_norm
    mask = jnp.where(norm_dist < 1, norm_dist, 0.0)
    mask = jnp.where(norm_dist > 1, mask, 1.0)
    k = k * mask[None]
    return jnp.fft.ifftn(jnp.fft.ifftshift(k, axes=axes), axes=axes).real


if __name__ == "__main__":
    key = jax.random.PRNGKey(0)
    k1, k2 = jax.random.split(key)

    # --- Test 1: tiny images, split (Karatsuba) path, f32 operands,
    #             non-divisor batch (exercises the padding + multi-step grid). ---
    B1, H1, W1 = 3, 16, 16
    img1 = jax.random.normal(k1, (B1, H1, W1), dtype=jnp.float32)
    alpha1 = jnp.asarray(0.7, dtype=jnp.float32)
    ref1 = gibbs_reference(img1, alpha1)
    out1 = jax.block_until_ready(
        gibbs_noise_layer(img1, alpha1, compute_dtype=jnp.float32,
                          pack_kspace=False, batch_tile=2))
    assert out1.shape == (B1, H1, W1) and out1.dtype == jnp.float32
    err1 = float(jnp.max(jnp.abs(out1 - ref1)))
    assert err1 < 1e-3, f"split/f32 max abs error {err1}"

    # --- Test 2: lane-dense images, packed re|im path, f32 operands. ---
    B2, H2, W2 = 2, 128, 128
    img2 = jax.random.normal(k2, (B2, H2, W2), dtype=jnp.float32)
    alpha2 = jnp.asarray(0.55, dtype=jnp.float32)
    ref2 = gibbs_reference(img2, alpha2)
    out2 = jax.block_until_ready(
        gibbs_noise_layer(img2, alpha2, compute_dtype=jnp.float32,
                          pack_kspace=True))
    assert out2.shape == (B2, H2, W2) and out2.dtype == jnp.float32
    err2 = float(jnp.max(jnp.abs(out2 - ref2)))
    assert err2 < 2e-3, f"packed/f32 max abs error {err2}"

    # --- Test 3: default bf16 MXU path, auto packing / tiling for this chip,
    #             validated at 128x128 (not just 16x16). ---
    out3 = jax.block_until_ready(gibbs_noise_layer(img2, alpha2))
    assert out3.shape == (B2, H2, W2) and out3.dtype == jnp.float32
    err3 = float(jnp.max(jnp.abs(out3 - ref2)))
    assert err3 < 2.5e-1, f"bf16 max abs error {err3}"

    print("KERNEL_OK")
</pallas_src>

<mosaic_0001>
module attributes {stable_mosaic.version = 11 : i64} {
  func.func @_gibbs_kernel_split(%arg0: i32, %arg1: memref<2x16x16xf32, #tpu.memory_space<vmem>>, %arg2: memref<16x16xf32, #tpu.memory_space<vmem>>, %arg3: memref<16x16xf32, #tpu.memory_space<vmem>>, %arg4: memref<16x16xf32, #tpu.memory_space<vmem>>, %arg5: memref<16x16xf32, #tpu.memory_space<vmem>>, %arg6: memref<16x16xf32, #tpu.memory_space<vmem>>, %arg7: memref<16x16xf32, #tpu.memory_space<vmem>>, %arg8: memref<2x16x16xf32, #tpu.memory_space<vmem>>) attributes {dimension_semantics = [#tpu.dimension_semantics<parallel>], iteration_bounds = array<i64: 2>, scalar_prefetch = 0 : i64, scratch_operands = 0 : i64, tpu.core_type = #tpu.core_type<tc>, window_params = [{transform_indices = @transform_0, window_bounds = array<i64: 2, 16, 16>}, {pipeline_mode = #tpu.pipeline_mode<synchronous>, transform_indices = @transform_1, window_bounds = array<i64: 16, 16>}, {pipeline_mode = #tpu.pipeline_mode<synchronous>, transform_indices = @transform_2, window_bounds = array<i64: 16, 16>}, {pipeline_mode = #tpu.pipeline_mode<synchronous>, transform_indices = @transform_3, window_bounds = array<i64: 16, 16>}, {pipeline_mode = #tpu.pipeline_mode<synchronous>, transform_indices = @transform_4, window_bounds = array<i64: 16, 16>}, {pipeline_mode = #tpu.pipeline_mode<synchronous>, transform_indices = @transform_5, window_bounds = array<i64: 16, 16>}, {pipeline_mode = #tpu.pipeline_mode<synchronous>, transform_indices = @transform_6, window_bounds = array<i64: 16, 16>}, {transform_indices = @transform_7, window_bounds = array<i64: 2, 16, 16>}]} {
    %c0 = arith.constant 0 : index
    %c0_0 = arith.constant 0 : index
    %0 = vector.load %arg3[%c0, %c0_0] : memref<16x16xf32, #tpu.memory_space<vmem>>, vector<16x16xf32>
    %c0_1 = arith.constant 0 : index
    %c0_2 = arith.constant 0 : index
    %1 = vector.load %arg4[%c0_1, %c0_2] : memref<16x16xf32, #tpu.memory_space<vmem>>, vector<16x16xf32>
    %c0_3 = arith.constant 0 : index
    %c0_4 = arith.constant 0 : index
    %2 = vector.load %arg5[%c0_3, %c0_4] : memref<16x16xf32, #tpu.memory_space<vmem>>, vector<16x16xf32>
    %c0_5 = arith.constant 0 : index
    %c0_6 = arith.constant 0 : index
    %3 = vector.load %arg6[%c0_5, %c0_6] : memref<16x16xf32, #tpu.memory_space<vmem>>, vector<16x16xf32>
    %c0_7 = arith.constant 0 : index
    %c0_8 = arith.constant 0 : index
    %4 = vector.load %arg7[%c0_7, %c0_8] : memref<16x16xf32, #tpu.memory_space<vmem>>, vector<16x16xf32>
    %c0_9 = arith.constant 0 : index
    %c0_10 = arith.constant 0 : index
    %5 = vector.load %arg2[%c0_9, %c0_10] : memref<16x16xf32, #tpu.memory_space<vmem>>, vector<16x16xf32>
    %c0_11 = arith.constant 0 : index
    %c0_12 = arith.constant 0 : index
    %c0_13 = arith.constant 0 : index
    %6 = vector.load %arg1[%c0_11, %c0_12, %c0_13] : memref<2x16x16xf32, #tpu.memory_space<vmem>>, vector<2x16x16xf32>
    %7 = vector.shape_cast %6 : vector<2x16x16xf32> to vector<32x16xf32>
    %cst = arith.constant dense<0.000000e+00> : vector<32x16xf32>
    %8 = tpu.matmul %7, %0, %cst {dimension_numbers = #tpu.dot_dimension_numbers<[1], [0], [0], [1], [0, 0, 1, 1], [], []>} : vector<32x16xf32>, vector<16x16xf32>, vector<32x16xf32> -> vector<32x16xf32>
    %cst_14 = arith.constant dense<0.000000e+00> : vector<32x16xf32>
    %9 = tpu.matmul %7, %1, %cst_14 {dimension_numbers = #tpu.dot_dimension_numbers<[1], [0], [0], [1], [0, 0, 1, 1], [], []>} : vector<32x16xf32>, vector<16x16xf32>, vector<32x16xf32> -> vector<32x16xf32>
    %10 = vector.extract_strided_slice %8 {offsets = [0, 0], sizes = [16, 16], strides = [1, 1]} : vector<32x16xf32> to vector<16x16xf32>
    %11 = vector.extract_strided_slice %9 {offsets = [0, 0], sizes = [16, 16], strides = [1, 1]} : vector<32x16xf32> to vector<16x16xf32>
    %cst_15 = arith.constant dense<0.000000e+00> : vector<16x16xf32>
    %12 = tpu.matmul %2, %10, %cst_15 {dimension_numbers = #tpu.dot_dimension_numbers<[1], [0], [0], [1], [0, 0, 1, 1], [], []>} : vector<16x16xf32>, vector<16x16xf32>, vector<16x16xf32> -> vector<16x16xf32>
    %cst_16 = arith.constant dense<0.000000e+00> : vector<16x16xf32>
    %13 = tpu.matmul %3, %11, %cst_16 {dimension_numbers = #tpu.dot_dimension_numbers<[1], [0], [0], [1], [0, 0, 1, 1], [], []>} : vector<16x16xf32>, vector<16x16xf32>, vector<16x16xf32> -> vector<16x16xf32>
    %14 = arith.addf %10, %11 : vector<16x16xf32>
    %cst_17 = arith.constant dense<0.000000e+00> : vector<16x16xf32>
    %15 = tpu.matmul %4, %14, %cst_17 {dimension_numbers = #tpu.dot_dimension_numbers<[1], [0], [0], [1], [0, 0, 1, 1], [], []>} : vector<16x16xf32>, vector<16x16xf32>, vector<16x16xf32> -> vector<16x16xf32>
    %16 = arith.subf %12, %13 : vector<16x16xf32>
    %17 = arith.subf %15, %12 : vector<16x16xf32>
    %18 = arith.subf %17, %13 : vector<16x16xf32>
    %19 = arith.mulf %16, %5 : vector<16x16xf32>
    %20 = arith.mulf %18, %5 : vector<16x16xf32>
    %cst_18 = arith.constant dense<0.000000e+00> : vector<16x16xf32>
    %21 = tpu.matmul %2, %19, %cst_18 {dimension_numbers = #tpu.dot_dimension_numbers<[1], [0], [0], [1], [0, 0, 1, 1], [], []>} : vector<16x16xf32>, vector<16x16xf32>, vector<16x16xf32> -> vector<16x16xf32>
    %cst_19 = arith.constant dense<0.000000e+00> : vector<16x16xf32>
    %22 = tpu.matmul %3, %20, %cst_19 {dimension_numbers = #tpu.dot_dimension_numbers<[1], [0], [0], [1], [0, 0, 1, 1], [], []>} : vector<16x16xf32>, vector<16x16xf32>, vector<16x16xf32> -> vector<16x16xf32>
    %23 = arith.subf %20, %19 : vector<16x16xf32>
    %cst_20 = arith.constant dense<0.000000e+00> : vector<16x16xf32>
    %24 = tpu.matmul %4, %23, %cst_20 {dimension_numbers = #tpu.dot_dimension_numbers<[1], [0], [0], [1], [0, 0, 1, 1], [], []>} : vector<16x16xf32>, vector<16x16xf32>, vector<16x16xf32> -> vector<16x16xf32>
    %25 = arith.addf %21, %22 : vector<16x16xf32>
    %26 = arith.addf %24, %21 : vector<16x16xf32>
    %27 = arith.subf %26, %22 : vector<16x16xf32>
    %cst_21 = arith.constant dense<0.000000e+00> : vector<16x16xf32>
    %28 = tpu.matmul %25, %0, %cst_21 {dimension_numbers = #tpu.dot_dimension_numbers<[1], [0], [0], [1], [0, 0, 1, 1], [], []>} : vector<16x16xf32>, vector<16x16xf32>, vector<16x16xf32> -> vector<16x16xf32>
    %cst_22 = arith.constant dense<0.000000e+00> : vector<16x16xf32>
    %29 = tpu.matmul %27, %1, %cst_22 {dimension_numbers = #tpu.dot_dimension_numbers<[1], [0], [0], [1], [0, 0, 1, 1], [], []>} : vector<16x16xf32>, vector<16x16xf32>, vector<16x16xf32> -> vector<16x16xf32>
    %30 = arith.addf %28, %29 : vector<16x16xf32>
    %c0_23 = arith.constant 0 : index
    %c0_24 = arith.constant 0 : index
    %c0_25 = arith.constant 0 : index
    %31 = vector.load %arg8[%c0_23, %c0_24, %c0_25] : memref<2x16x16xf32, #tpu.memory_space<vmem>>, vector<1x16x16xf32>
    %32 = vector.shape_cast %31 : vector<1x16x16xf32> to vector<16x16xf32>
    %33 = vector.shape_cast %30 : vector<16x16xf32> to vector<1x16x16xf32>
    tpu.vector_store %arg8[%c0_23, %c0_24, %c0_25], %33 {strides = array<i32>} : memref<2x16x16xf32, #tpu.memory_space<vmem>>, vector<1x16x16xf32>,
    %34 = vector.extract_strided_slice %8 {offsets = [16, 0], sizes = [16, 16], strides = [1, 1]} : vector<32x16xf32> to vector<16x16xf32>
    %35 = vector.extract_strided_slice %9 {offsets = [16, 0], sizes = [16, 16], strides = [1, 1]} : vector<32x16xf32> to vector<16x16xf32>
    %cst_26 = arith.constant dense<0.000000e+00> : vector<16x16xf32>
    %36 = tpu.matmul %2, %34, %cst_26 {dimension_numbers = #tpu.dot_dimension_numbers<[1], [0], [0], [1], [0, 0, 1, 1], [], []>} : vector<16x16xf32>, vector<16x16xf32>, vector<16x16xf32> -> vector<16x16xf32>
    %cst_27 = arith.constant dense<0.000000e+00> : vector<16x16xf32>
    %37 = tpu.matmul %3, %35, %cst_27 {dimension_numbers = #tpu.dot_dimension_numbers<[1], [0], [0], [1], [0, 0, 1, 1], [], []>} : vector<16x16xf32>, vector<16x16xf32>, vector<16x16xf32> -> vector<16x16xf32>
    %38 = arith.addf %34, %35 : vector<16x16xf32>
    %cst_28 = arith.constant dense<0.000000e+00> : vector<16x16xf32>
    %39 = tpu.matmul %4, %38, %cst_28 {dimension_numbers = #tpu.dot_dimension_numbers<[1], [0], [0], [1], [0, 0, 1, 1], [], []>} : vector<16x16xf32>, vector<16x16xf32>, vector<16x16xf32> -> vector<16x16xf32>
    %40 = arith.subf %36, %37 : vector<16x16xf32>
    %41 = arith.subf %39, %36 : vector<16x16xf32>
    %42 = arith.subf %41, %37 : vector<16x16xf32>
    %43 = arith.mulf %40, %5 : vector<16x16xf32>
    %44 = arith.mulf %42, %5 : vector<16x16xf32>
    %cst_29 = arith.constant dense<0.000000e+00> : vector<16x16xf32>
    %45 = tpu.matmul %2, %43, %cst_29 {dimension_numbers = #tpu.dot_dimension_numbers<[1], [0], [0], [1], [0, 0, 1, 1], [], []>} : vector<16x16xf32>, vector<16x16xf32>, vector<16x16xf32> -> vector<16x16xf32>
    %cst_30 = arith.constant dense<0.000000e+00> : vector<16x16xf32>
    %46 = tpu.matmul %3, %44, %cst_30 {dimension_numbers = #tpu.dot_dimension_numbers<[1], [0], [0], [1], [0, 0, 1, 1], [], []>} : vector<16x16xf32>, vector<16x16xf32>, vector<16x16xf32> -> vector<16x16xf32>
    %47 = arith.subf %44, %43 : vector<16x16xf32>
    %cst_31 = arith.constant dense<0.000000e+00> : vector<16x16xf32>
    %48 = tpu.matmul %4, %47, %cst_31 {dimension_numbers = #tpu.dot_dimension_numbers<[1], [0], [0], [1], [0, 0, 1, 1], [], []>} : vector<16x16xf32>, vector<16x16xf32>, vector<16x16xf32> -> vector<16x16xf32>
    %49 = arith.addf %45, %46 : vector<16x16xf32>
    %50 = arith.addf %48, %45 : vector<16x16xf32>
    %51 = arith.subf %50, %46 : vector<16x16xf32>
    %cst_32 = arith.constant dense<0.000000e+00> : vector<16x16xf32>
    %52 = tpu.matmul %49, %0, %cst_32 {dimension_numbers = #tpu.dot_dimension_numbers<[1], [0], [0], [1], [0, 0, 1, 1], [], []>} : vector<16x16xf32>, vector<16x16xf32>, vector<16x16xf32> -> vector<16x16xf32>
    %cst_33 = arith.constant dense<0.000000e+00> : vector<16x16xf32>
    %53 = tpu.matmul %51, %1, %cst_33 {dimension_numbers = #tpu.dot_dimension_numbers<[1], [0], [0], [1], [0, 0, 1, 1], [], []>} : vector<16x16xf32>, vector<16x16xf32>, vector<16x16xf32> -> vector<16x16xf32>
    %54 = arith.addf %52, %53 : vector<16x16xf32>
    %c1 = arith.constant 1 : index
    %c0_34 = arith.constant 0 : index
    %c0_35 = arith.constant 0 : index
    %55 = vector.load %arg8[%c1, %c0_34, %c0_35] : memref<2x16x16xf32, #tpu.memory_space<vmem>>, vector<1x16x16xf32>
    %56 = vector.shape_cast %55 : vector<1x16x16xf32> to vector<16x16xf32>
    %57 = vector.shape_cast %54 : vector<16x16xf32> to vector<1x16x16xf32>
    tpu.vector_store %arg8[%c1, %c0_34, %c0_35], %57 {strides = array<i32>} : memref<2x16x16xf32, #tpu.memory_space<vmem>>, vector<1x16x16xf32>,
    return
  }
  func.func @transform_0(%arg0: i32) -> (i32, i32, i32) {
    %c0_i32 = arith.constant 0 : i32
    %c0_i32_0 = arith.constant 0 : i32
    %c0_i32_1 = arith.constant 0 : i32
    return %arg0, %c0_i32, %c0_i32_0 : i32, i32, i32
  }
  func.func @transform_1(%arg0: i32) -> (i32, i32) {
    %c0_i32 = arith.constant 0 : i32
    %c0_i32_0 = arith.constant 0 : i32
    %c0_i32_1 = arith.constant 0 : i32
    return %c0_i32, %c0_i32_0 : i32, i32
  }
  func.func @transform_2(%arg0: i32) -> (i32, i32) {
    %c0_i32 = arith.constant 0 : i32
    %c0_i32_0 = arith.constant 0 : i32
    %c0_i32_1 = arith.constant 0 : i32
    return %c0_i32, %c0_i32_0 : i32, i32
  }
  func.func @transform_3(%arg0: i32) -> (i32, i32) {
    %c0_i32 = arith.constant 0 : i32
    %c0_i32_0 = arith.constant 0 : i32
    %c0_i32_1 = arith.constant 0 : i32
    return %c0_i32, %c0_i32_0 : i32, i32
  }
  func.func @transform_4(%arg0: i32) -> (i32, i32) {
    %c0_i32 = arith.constant 0 : i32
    %c0_i32_0 = arith.constant 0 : i32
    %c0_i32_1 = arith.constant 0 : i32
    return %c0_i32, %c0_i32_0 : i32, i32
  }
  func.func @transform_5(%arg0: i32) -> (i32, i32) {
    %c0_i32 = arith.constant 0 : i32
    %c0_i32_0 = arith.constant 0 : i32
    %c0_i32_1 = arith.constant 0 : i32
    return %c0_i32, %c0_i32_0 : i32, i32
  }
  func.func @transform_6(%arg0: i32) -> (i32, i32) {
    %c0_i32 = arith.constant 0 : i32
    %c0_i32_0 = arith.constant 0 : i32
    %c0_i32_1 = arith.constant 0 : i32
    return %c0_i32, %c0_i32_0 : i32, i32
  }
  func.func @transform_7(%arg0: i32) -> (i32, i32, i32) {
    %c0_i32 = arith.constant 0 : i32
    %c0_i32_0 = arith.constant 0 : i32
    %c0_i32_1 = arith.constant 0 : i32
    return %arg0, %c0_i32, %c0_i32_0 : i32, i32, i32
  }
}

</mosaic_0001>

<bundles_post_ra>
// kernel: _gibbs_impl.1
= control target key start
LH: loop header
LB: loop body
LE: loop exit
PB: predicated region body
PF: predicated region fallthrough
CT: control target
= control target key end

     0   :  { %s2148_s24 = smov 0   ;;  %s2358_s0 = inlined_call_operand.vmem [shape: f32[4,16,16], index: 0, kind: input, shape index: {}]   ;;  %s2359_s1 = inlined_call_operand.vmem [shape: f32[16,16], index: 1, kind: input, shape index: {}]   ;;  %s2360_s2 = inlined_call_operand.vmem [shape: f32[16,16], index: 2, kind: input, shape index: {}, may-alias: {2,4}]   ;;  %s2361_s3 = inlined_call_operand.vmem [shape: f32[16,16], index: 3, kind: input, shape index: {}, may-alias: {3,5}]   ;;  %s2362_s4 = inlined_call_operand.vmem [shape: f32[16,16], index: 4, kind: input, shape index: {}, may-alias: {2,4}]   ;;  %s2363_s5 = inlined_call_operand.vmem [shape: f32[16,16], index: 5, kind: input, shape index: {}, may-alias: {3,5}]   ;;  %s2364_s6 = inlined_call_operand.vmem [shape: f32[16,16], index: 6, kind: input, shape index: {}]   ;;  %s2365_s7 = inlined_call_operand.vmem [shape: f32[4,16,16], index: 7, kind: output, shape index: {}]  }
   0x1 LB: > { %s1827_s25 = sadd.s32 4294967295, %s2106_s24   ;;  %p1831_p0 = scmp.ge.s32.totalorder %s2106_s24, 1  ;;  %s2106_s24 = sphi %s2148_s24, %s17_s24  }
   0x2   : > { %p239_p1 = scmp.lt.s32.totalorder %s2106_s24, 3 }
   0x4   : > { %p240_p2 = pnand %p1831_p0, %p239_p1 }
   0x5   : > { %s1832_s9 = sshll.u32 (!%p240_p2), %s1827_s25, 1 }
   0x6   : > { %243 = sbr.rel (%p240_p2) target bundleno = 1235 (0x4d3), region = 48  ;;  %p274_p3 = scmp.lt.s32.totalorder (!%p240_p2), %s1832_s9, 3 }
   0xb   : > { %v2159_v0 = vld [vmem:[%s2360_s2 + $0x8] sm:$0xff]  ;;  %v2169_v2 = vld [vmem:[%s2360_s2] sm:$0xff]  ;;  %s2367_s9 = smov (!%p274_p3, %s1832_s9), 3  ;;  %vm303_vm0 = vcmask 130048  }
   0xc   : > { %v2164_v1 = vld [vmem:[%s2361_s3 + $0x8] sm:$0xff]  ;;  %1960 = vmatprep.subr.mxu0 %v2159_v0  ;;  %v2176_v3 = vld [vmem:[%s2361_s3] sm:$0xff]  ;;  %s1882_s12 = sshll.u32 %s2367_s9, 4 }
   0xd   : > { %1970 = vmatprep.subr.mxu1 %v2164_v1  ;;  %1961 = vmatpush3.msra.mxu0 %v2159_v0  ;;  %s278_s15 = scalar_lea.vmem %s2358_s0, %s1882_s12  ;;  %v2203_v8 = vld [vmem:[%s2362_s4] sm:$0xff]  ;;  %v2217_v14 = vld [vmem:[%s2362_s4 + $0x8] sm:$0xff]  ;;  %s2321_s14 = scalar_lea.vmem %s2365_s7, %s1882_s12 }
   0xe   : > { %1971 = vmatpush3.msra.mxu1 %v2164_v1  ;;  %1962 = vmatprep.subr.mxu0 %v2169_v2  ;;  %v299_v4 = vld [vmem:[%s278_s15] sm:$0xff]  ;;  %v300_v5 = vld [vmem:[%s278_s15 + $0x8] sm:$0xff]  ;;  %v301_v6 = vld [vmem:[%s278_s15 + $0x10] sm:$0xff] }
   0xf   : > { %1972 = vmatprep.subr.mxu1 %v2176_v3  ;;  %1963 = vmatpush3.msra.mxu0 %v2169_v2  ;;  %v302_v7 = vld [vmem:[%s278_s15 + $0x18] sm:$0xff]  ;;  %v2208_v9 = vld [vmem:[%s2363_s5] sm:$0xff]  ;;  %v2222_v16 = vld [vmem:[%s2363_s5 + $0x8] sm:$0xff] }
  0x10   : > { %1973 = vmatpush3.msra.mxu1 %v2176_v3  ;;  %1964 = vmatprep.mubr.msk.f32.mxu0 %vm303_vm0, %v299_v4  ;;  %v2227_v17 = vld [vmem:[%s2364_s6] sm:$0xff]  ;;  %v2236_v19 = vld [vmem:[%s2364_s6 + $0x8] sm:$0xff] }
  0x11   : > { %1974 = vmatprep.mubr.msk.f32.mxu1 %vm303_vm0, %v299_v4  ;;  %1965 = vmatmul.mubr.msk.f32.vlgmr.msra.gmra.mxu0 %vm303_vm0, %v300_v5  ;;  %v2257_v25 = vld [vmem:[%s2359_s1 + $0x8] sm:$0xff]  ;;  %v2262_v29 = vld [vmem:[%s2359_s1] sm:$0xff] }
  0x12   : > { %1975 = vmatmul.mubr.msk.f32.vlgmr.msra.gmra.mxu1 %vm303_vm0, %v300_v5  ;;  %1967 = vmatprep.mubr.msk.f32.mxu0 %vm303_vm0, %v301_v6 }
  0x13   : > { %1977 = vmatprep.mubr.msk.f32.mxu1 %vm303_vm0, %v301_v6 }
  0x15   : > { %1968 = vmatmul.mubr.msk.f32.gmra.mxu0 %vm303_vm0, %v302_v7 }
  0x16   : > { %1978 = vmatmul.mubr.msk.f32.gmra.mxu1 %vm303_vm0, %v302_v7  ;;  %1984 = vmatprep.mubr.msk.f32.mxu0 %vm303_vm0, %v2203_v8 }
  0x17   : > { %1991 = vmatprep.mubr.msk.f32.mxu1 %vm303_vm0, %v2208_v9 }
  0xd1   : > { %v1966_v10 = vpop.f32.mrf.mxu0 }
  0xd2   : > { %v1976_v11 = vpop.f32.mrf.mxu1  ;;  %1980 = vmatprep.subr.mxu0 %v1966_v10 }
  0xd3   : > { %1987 = vmatprep.subr.mxu1 %v1976_v11  ;;  %v382_v12 = vpop.f32.mrf.mxu0  ;;  %1981 = vmatpush3.msra.mxu0 %v1966_v10  ;;  %v649_v15 = vadd.f32 %v1976_v11, %v1966_v10 }
  0xd4   : > { %v467_v13 = vpop.f32.mrf.mxu1  ;;  %1988 = vmatpush3.msra.mxu1 %v1976_v11  ;;  %1982 = vmatprep.subr.mxu0 %v382_v12 }
  0xd5   : > { %1989 = vmatprep.subr.mxu1 %v467_v13  ;;  %1983 = vmatpush3.msra.mxu0 %v382_v12  ;;  %v648_v18 = vadd.f32 %v467_v13, %v382_v12  ;;  %v2246_v20 = vpop.f32.mrf.mxu0 }
  0xd6   : > { %1990 = vmatpush3.msra.mxu1 %v467_v13  ;;  %1985 = vmatmul.mubr.msk.f32.vlgmr.msra.gmra.mxu0 %vm303_vm0, %v2217_v14  ;;  %v2248_v21 = vpop.f32.mrf.mxu1 }
  0xd7   : > { %1994 = vmatprep.subr.mxu0 %v649_v15  ;;  %1992 = vmatmul.mubr.msk.f32.vlgmr.msra.gmra.mxu1 %vm303_vm0, %v2222_v16  ;;  %v2250_v22 = vpop.f32.mrf.mxu0  ;;  %v1287_v56 = vadd.f32 %v2248_v21, %v2246_v20 }
  0xd8   : > { %1995 = vmatpush3.msra.mxu0 %v649_v15  ;;  %1998 = vmatprep.mubr.msk.f32.mxu0 %vm303_vm0, %v2227_v17  ;;  %v2252_v23 = vpop.f32.mrf.mxu1 }
  0xd9   : > { %1996 = vmatprep.subr.mxu0 %v648_v18  ;;  %2005 = vmatprep.mubr.msk.f32.mxu1 %vm303_vm0, %v2203_v8  ;;  %v1286_v57 = vadd.f32 %v2252_v23, %v2250_v22 }
  0xda   : > { %1997 = vmatpush3.msra.mxu0 %v648_v18 }
  0xdb   : > { %1999 = vmatmul.mubr.msk.f32.vlgmr.msra.gmra.mxu0 %vm303_vm0, %v2236_v19 }
  0xdc   : > { %2012 = vmatprep.mubr.msk.f32.mxu0 %vm303_vm0, %v2208_v9 }
 0x196   : > { %v1986_v24 = vpop.f32.mrf.mxu0 }
 0x197   : > { %v1993_v26 = vpop.f32.mrf.mxu1 }
 0x198   : > { %v732_v27 = vsub.f32 %v1986_v24, %v1993_v26  ;;  %v558_v28 = vpop.f32.mrf.mxu0 }
 0x199   : > { %v639_v30 = vpop.f32.mrf.mxu1 }
 0x19a   : > { %v738_v31 = vmul.f32 %v732_v27, %v2257_v25  ;;  %v731_v32 = vsub.f32 %v558_v28, %v639_v30 }
 0x19b   : > { %v2000_v33 = vpop.f32.mrf.mxu0 }
 0x19c   : > { %v734_v34 = vsub.f32 %v2000_v33, %v1986_v24  ;;  %v737_v35 = vmul.f32 %v731_v32, %v2262_v29  ;;  %2001 = vmatprep.subr.mxu1 %v738_v31 }
 0x19d   : > { %v722_v36 = vpop.f32.mrf.mxu0  ;;  %2002 = vmatpush3.msra.mxu1 %v738_v31 }
 0x19e   : > { %v736_v37 = vsub.f32 %v734_v34, %v1993_v26  ;;  %v733_v38 = vsub.f32 %v722_v36, %v558_v28  ;;  %2003 = vmatprep.subr.mxu1 %v737_v35 }
 0x19f   : > { %2004 = vmatpush3.msra.mxu1 %v737_v35 }
 0x1a0   : > { %v735_v39 = vsub.f32 %v733_v38, %v639_v30  ;;  %v740_v40 = vmul.f32 %v736_v37, %v2257_v25  ;;  %2006 = vmatmul.mubr.msk.f32.vlgmr.msra.gmra.mxu1 %vm303_vm0, %v2217_v14 }
 0x1a1   : > { %2019 = vmatprep.mubr.msk.f32.mxu1 %vm303_vm0, %v2227_v17 }
 0x1a2   : > { %2008 = vmatprep.subr.mxu0 %v740_v40  ;;  %v739_v41 = vmul.f32 %v735_v39, %v2262_v29  ;;  %v892_v42 = vsub.f32 %v740_v40, %v738_v31 }
 0x1a3   : > { %2009 = vmatpush3.msra.mxu0 %v740_v40 }
 0x1a4   : > { %2010 = vmatprep.subr.mxu0 %v739_v41  ;;  %2015 = vmatprep.subr.mxu1 %v892_v42  ;;  %v891_v43 = vsub.f32 %v739_v41, %v737_v35 }
 0x1a5   : > { %2011 = vmatpush3.msra.mxu0 %v739_v41  ;;  %2016 = vmatpush3.msra.mxu1 %v892_v42 }
 0x1a6   : > { %2013 = vmatmul.mubr.msk.f32.vlgmr.msra.gmra.mxu0 %vm303_vm0, %v2222_v16  ;;  %2017 = vmatprep.subr.mxu1 %v891_v43 }
 0x1a7   : > { %2022 = vmatprep.subr.mxu0 %v2164_v1  ;;  %2018 = vmatpush3.msra.mxu1 %v891_v43 }
 0x1a8   : > { %2023 = vmatpush3.msra.mxu0 %v2164_v1  ;;  %2020 = vmatmul.mubr.msk.f32.vlgmr.msra.gmra.mxu1 %vm303_vm0, %v2236_v19 }
 0x1a9   : > { %2024 = vmatprep.subr.mxu0 %v2176_v3  ;;  %2029 = vmatprep.subr.mxu1 %v2159_v0 }
 0x1aa   : > { %2025 = vmatpush3.msra.mxu0 %v2176_v3  ;;  %2030 = vmatpush3.msra.mxu1 %v2159_v0 }
 0x1ab   : > { %2031 = vmatprep.subr.mxu1 %v2169_v2  ;;  %2036 = vmatprep.subr.mxu0 %v2246_v20 }
 0x1ac   : > { %2032 = vmatpush3.msra.mxu1 %v2169_v2 }
 0x1ad   : > { %2043 = vmatprep.subr.mxu1 %v2248_v21 }
 0x260   : > { %v2007_v44 = vpop.f32.mrf.mxu1 }
 0x262   : > { %v807_v45 = vpop.f32.mrf.mxu1 }
 0x266   : > { %v2014_v46 = vpop.f32.mrf.mxu0 }
 0x267   : > { %v894_v50 = vadd.f32 %v2014_v46, %v2007_v44 }
 0x268   : > { %v882_v47 = vpop.f32.mrf.mxu0  ;;  %v2021_v48 = vpop.f32.mrf.mxu1 }
 0x269   : > { %v893_v49 = vadd.f32 %v882_v47, %v807_v45  ;;  %v967_v51 = vadd.f32 %v2021_v48, %v2007_v44 }
 0x26a   : > { %v961_v52 = vpop.f32.mrf.mxu1 }
 0x26b   : > { %v962_v53 = vadd.f32 %v961_v52, %v807_v45  ;;  %2033 = vmatprep.mubr.msk.f32.mxu1 %vm303_vm0, %v893_v49  ;;  %v971_v55 = vsub.f32 %v967_v51, %v2014_v46 }
 0x26c   : > { %2034 = vmatmul.mubr.msk.f32.vlgmr.msra.gmra.mxu1 %vm303_vm0, %v894_v50 }
 0x26d   : > { %v970_v54 = vsub.f32 %v962_v53, %v882_v47  ;;  %2044 = vmatpush3.msra.mxu1 %v2248_v21  ;;  %2047 = vmatprep.mubr.msk.f32.mxu1 %vm303_vm0, %v2208_v9 }
 0x26e   : > { %2045 = vmatprep.subr.mxu1 %v2252_v23 }
 0x26f   : > { %2046 = vmatpush3.msra.mxu1 %v2252_v23  ;;  %2026 = vmatprep.mubr.msk.f32.mxu0 %vm303_vm0, %v970_v54 }
 0x270   : > { %2027 = vmatmul.mubr.msk.f32.vlgmr.msra.gmra.mxu0 %vm303_vm0, %v971_v55  ;;  %2048 = vmatmul.mubr.msk.f32.vlgmr.msra.gmra.mxu1 %vm303_vm0, %v2222_v16 }
 0x271   : > { %2037 = vmatpush3.msra.mxu0 %v2246_v20  ;;  %2040 = vmatprep.mubr.msk.f32.mxu0 %vm303_vm0, %v2203_v8 }
 0x272   : > { %2038 = vmatprep.subr.mxu0 %v2250_v22  ;;  %2061 = vmatprep.mubr.msk.f32.mxu1 %vm303_vm0, %v2203_v8 }
 0x273   : > { %2039 = vmatpush3.msra.mxu0 %v2250_v22 }
 0x274   : > { %2050 = vmatprep.subr.mxu0 %v1287_v56  ;;  %2041 = vmatmul.mubr.msk.f32.vlgmr.msra.gmra.mxu0 %vm303_vm0, %v2217_v14 }
 0x275   : > { %2051 = vmatpush3.msra.mxu0 %v1287_v56  ;;  %2054 = vmatprep.mubr.msk.f32.mxu0 %vm303_vm0, %v2227_v17 }
 0x276   : > { %2052 = vmatprep.subr.mxu0 %v1286_v57 }
 0x277   : > { %2053 = vmatpush3.msra.mxu0 %v1286_v57 }
 0x278   : > { %2055 = vmatmul.mubr.msk.f32.vlgmr.msra.gmra.mxu0 %vm303_vm0, %v2236_v19 }
 0x279   : > { %2068 = vmatprep.mubr.msk.f32.mxu0 %vm303_vm0, %v2208_v9 }
 0x32c   : > { %v2035_v58 = vpop.f32.mrf.mxu1 }
 0x32e   : > { %v1125_v59 = vpop.f32.mrf.mxu1 }
 0x330   : > { %v2028_v60 = vpop.f32.mrf.mxu0  ;;  %v2049_v61 = vpop.f32.mrf.mxu1 }
 0x331   : > { %v1131_v62 = vadd.f32 %v2035_v58, %v2028_v60 }
 0x332   : > { %v1044_v63 = vpop.f32.mrf.mxu0  ;;  %v1277_v6 = vpop.f32.mrf.mxu1 }
 0x333   : > { %1135 = vst.msk [vmem:[%s2321_s14 + $0x8] sm:$0xff] %vm303_vm0, %v1131_v62  ;;  %v1126_v4 = vadd.f32 %v1125_v59, %v1044_v63 }
 0x334   : > { %v2042_v5 = vpop.f32.mrf.mxu0 }
 0x335   : > { %1134 = vst.msk [vmem:[%s2321_s14] sm:$0xff] %vm303_vm0, %v1126_v4  ;;  %v1364_v7 = vsub.f32 %v2042_v5, %v2049_v61 }
 0x336   : > { %v1202_v8 = vpop.f32.mrf.mxu0 }
 0x337   : > { %v1370_v9 = vmul.f32 %v1364_v7, %v2257_v25  ;;  %v1363_v10 = vsub.f32 %v1202_v8, %v1277_v6 }
 0x338   : > { %v2056_v11 = vpop.f32.mrf.mxu0 }
 0x339   : > { %v1369_v12 = vmul.f32 %v1363_v10, %v2262_v29  ;;  %v1366_v13 = vsub.f32 %v2056_v11, %v2042_v5  ;;  %2057 = vmatprep.subr.mxu1 %v1370_v9 }
 0x33a   : > { %v1354_v15 = vpop.f32.mrf.mxu0  ;;  %2058 = vmatpush3.msra.mxu1 %v1370_v9 }
 0x33b   : > { %v1368_v18 = vsub.f32 %v1366_v13, %v2049_v61  ;;  %v1365_v20 = vsub.f32 %v1354_v15, %v1202_v8  ;;  %2059 = vmatprep.subr.mxu1 %v1369_v12 }
 0x33c   : > { %2060 = vmatpush3.msra.mxu1 %v1369_v12 }
 0x33d   : > { %v1367_v21 = vsub.f32 %v1365_v20, %v1277_v6  ;;  %v1372_v22 = vmul.f32 %v1368_v18, %v2257_v25  ;;  %2062 = vmatmul.mubr.msk.f32.vlgmr.msra.gmra.mxu1 %vm303_vm0, %v2217_v14 }
 0x33e   : > { %2075 = vmatprep.mubr.msk.f32.mxu1 %vm303_vm0, %v2227_v17 }
 0x33f   : > { %2064 = vmatprep.subr.mxu0 %v1372_v22  ;;  %v1371_v23 = vmul.f32 %v1367_v21, %v2262_v29  ;;  %v1524_v24 = vsub.f32 %v1372_v22, %v1370_v9 }
 0x340   : > { %2065 = vmatpush3.msra.mxu0 %v1372_v22 }
 0x341   : > { %2066 = vmatprep.subr.mxu0 %v1371_v23  ;;  %2071 = vmatprep.subr.mxu1 %v1524_v24  ;;  %v1523_v26 = vsub.f32 %v1371_v23, %v1369_v12 }
 0x342   : > { %2067 = vmatpush3.msra.mxu0 %v1371_v23  ;;  %2072 = vmatpush3.msra.mxu1 %v1524_v24 }
 0x343   : > { %2069 = vmatmul.mubr.msk.f32.vlgmr.msra.gmra.mxu0 %vm303_vm0, %v2222_v16  ;;  %2073 = vmatprep.subr.mxu1 %v1523_v26 }
 0x344   : > { %2074 = vmatpush3.msra.mxu1 %v1523_v26  ;;  %2078 = vmatprep.subr.mxu0 %v2164_v1 }
 0x345   : > { %2076 = vmatmul.mubr.msk.f32.vlgmr.msra.gmra.mxu1 %vm303_vm0, %v2236_v19  ;;  %2085 = vmatprep.subr.mxu1 %v2159_v0 }
 0x346   : > { %2086 = vmatpush3.msra.mxu1 %v2159_v0  ;;  %2079 = vmatpush3.msra.mxu0 %v2164_v1 }
 0x347   : > { %2087 = vmatprep.subr.mxu1 %v2169_v2  ;;  %2080 = vmatprep.subr.mxu0 %v2176_v3 }
 0x348   : > { %2088 = vmatpush3.msra.mxu1 %v2169_v2  ;;  %2081 = vmatpush3.msra.mxu0 %v2176_v3 }
 0x3fd   : > { %v2063_v14 = vpop.f32.mrf.mxu1 }
 0x3ff   : > { %v1439_v16 = vpop.f32.mrf.mxu1 }
 0x403   : > { %v2070_v17 = vpop.f32.mrf.mxu0 }
 0x404   : > { %v1526_v28 = vadd.f32 %v2070_v17, %v2063_v14 }
 0x405   : > { %v1514_v25 = vpop.f32.mrf.mxu0  ;;  %v2077_v27 = vpop.f32.mrf.mxu1 }
 0x406   : > { %v1525_v19 = vadd.f32 %v1514_v25, %v1439_v16  ;;  %v1599_v29 = vadd.f32 %v2077_v27, %v2063_v14 }
 0x407   : > { %v1593_v0 = vpop.f32.mrf.mxu1 }
 0x408   : > { %v1594_v1 = vadd.f32 %v1593_v0, %v1439_v16  ;;  %2089 = vmatprep.mubr.msk.f32.mxu1 %vm303_vm0, %v1525_v19  ;;  %v1603_v2 = vsub.f32 %v1599_v29, %v2070_v17 }
 0x409   : > { %2090 = vmatmul.mubr.msk.f32.vlgmr.msra.gmra.mxu1 %vm303_vm0, %v1526_v28 }
 0x40a   : > { %v1602_v30 = vsub.f32 %v1594_v1, %v1514_v25 }
 0x40c   : > { %2082 = vmatprep.mubr.msk.f32.mxu0 %vm303_vm0, %v1602_v30 }
 0x40d   : > { %2083 = vmatmul.mubr.msk.f32.vlgmr.msra.gmra.mxu0 %vm303_vm0, %v1603_v2 }
 0x4c9   : > { %v2091_v3 = vpop.f32.mrf.mxu1 }
 0x4cb   : > { %v1757_v33 = vpop.f32.mrf.mxu1 }
 0x4cd   : > { %v2084_v31 = vpop.f32.mrf.mxu0 }
 0x4ce   : > { %v1763_v32 = vadd.f32 %v2091_v3, %v2084_v31 }
 0x4cf   : > { %v1676_v34 = vpop.f32.mrf.mxu0 }
 0x4d0   : > { %1879 = vst.msk [vmem:[%s2321_s14 + $0x18] sm:$0xff] %vm303_vm0, %v1763_v32  ;;  %v1758_v35 = vadd.f32 %v1757_v33, %v1676_v34 }
 0x4d2   : > { %1878 = vst.msk [vmem:[%s2321_s14 + $0x10] sm:$0xff] %vm303_vm0, %v1758_v35 }
 0x4d3 PF: > { %s17_s24 = sadd.s32 1, %s2106_s24  }
 0x4d4   : > { %p14_p4 = scmp.ge.s32.totalorder %s17_s24, 4  }
 0x4d6   :  { %16 = sbr.rel (!%p14_p4) target bundleno = 1 (0x1), region = 79 }

</bundles_post_ra>
